<compile_context>
chip_gen: v7x
topology: tpu7x:2x2x1
jax: 0.10.0
libtpu: 0.0.40
codegen_flags: <defaults>
</compile_context>

<pallas_src>
import jax
import jax.numpy as jnp
from jax.experimental import pallas as pl
from jax.experimental.pallas import tpu as pltpu

_MIN = 1e-5
_MAX = 1e6

_TARGET_TILE_BYTES = 2 << 20    # ~2 MiB per tile -> 8 MiB double-buffered in+out
_SMALL_INPUT_BYTES = 256 << 10  # below this, skip Pallas and let XLA fuse


def _round_up(x, m):
    return ((x + m - 1) // m) * m


def _mean_act_kernel(x_ref, o_ref):
    # Compute in f32 (v5e has no bf16 VPU/EUP; exp/clamp sit in DMA slack
    # anyway), cast back to the I/O dtype on store.
    x = x_ref[...].astype(jnp.float32)
    # clamp(exp(x), 1e-5, 1e6); exp overflow to +inf clamps to 1e6 like torch.
    o_ref[...] = jnp.clip(jnp.exp(x), _MIN, _MAX).astype(o_ref.dtype)


def _pick_width(n, max_cols=1024):
    """Largest multiple of 128 (<= max_cols) that divides n, or 0 if none."""
    for cand in range(max_cols, 0, -128):
        if n % cand == 0:
            return cand
    return 0


def mean_act(x, *, min_pallas_bytes=_SMALL_INPUT_BYTES):
    """Elementwise clamp(exp(x), 1e-5, 1e6) for an array of any shape."""
    orig_shape = x.shape
    orig_dtype = x.dtype
    n = x.size
    itemsize = jnp.dtype(orig_dtype).itemsize

    # --- small-input bypass: launch overhead dominates; let XLA fuse it. ---
    if n == 0 or n * itemsize < min_pallas_bytes:
        return jnp.clip(jnp.exp(x.astype(jnp.float32)), _MIN, _MAX).astype(orig_dtype)

    # --- choose a lane-dense 2-D slab (rows, w), copy-free when possible. ---
    w = _pick_width(n)
    padded = w == 0
    if padded:
        # Fallback: no multiple-of-128 divisor of n exists.  Pad only up to a
        # multiple of w (not of block_rows) and slice the tail off afterwards.
        w = 1024
        rows = pl.cdiv(n, w)
        flat = jnp.pad(x.reshape(-1), (0, rows * w - n))
    else:
        rows = n // w
        flat = x.reshape(-1)            # metadata-only
    x2 = flat.reshape(rows, w)          # metadata-only

    # --- block sizing ---
    sub = 32 // itemsize                # sublane multiple: f32=8, bf16=16, int8=32
    max_block_rows = max(sub, (_TARGET_TILE_BYTES // (w * itemsize)) // sub * sub)

    if rows <= max_block_rows:
        # Single block covering the full rows extent (legal for any size since
        # it equals the array dim) ...
        block_rows = rows
        # ... unless the input is > ~1 MiB: split into >= 2 blocks so both
        # v7x TensorCores get work under dimension_semantics=("parallel",).
        if rows * w * itemsize > (1 << 20) and rows > 2 * sub:
            block_rows = max(sub, _round_up(pl.cdiv(rows, 2), sub))
    else:
        block_rows = max_block_rows

    grid = (pl.cdiv(rows, block_rows),)

    cost = pl.CostEstimate(
        flops=2 * n,                    # clamp (min + max)
        transcendentals=n,              # exp
        bytes_accessed=2 * rows * w * itemsize,
    )

    out2 = pl.pallas_call(
        _mean_act_kernel,
        out_shape=jax.ShapeDtypeStruct((rows, w), orig_dtype),
        grid_spec=pltpu.PrefetchScalarGridSpec(
            num_scalar_prefetch=0,
            grid=grid,
            in_specs=[pl.BlockSpec((block_rows, w), lambda i: (i, 0))],
            out_specs=pl.BlockSpec((block_rows, w), lambda i: (i, 0)),
        ),
        compiler_params=pltpu.CompilerParams(
            dimension_semantics=("parallel",),
        ),
        cost_estimate=cost,
    )(x2)

    if padded:
        return out2.reshape(-1)[:n].reshape(orig_shape)
    return out2.reshape(orig_shape)     # metadata-only


def _reference(x):
    return jnp.clip(jnp.exp(x.astype(jnp.float32)), _MIN, _MAX).astype(x.dtype)


if __name__ == "__main__":
    key = jax.random.PRNGKey(0)

    # Small 4-D input consistent with an elementwise activation module.
    x = jax.random.normal(key, (2, 4, 16, 16), dtype=jnp.float32) * 3.0
    ref = _reference(x)

    # 1) Default path (small input -> fused jnp bypass).
    out_bypass = jax.block_until_ready(mean_act(x))
    assert out_bypass.shape == x.shape and out_bypass.dtype == x.dtype
    assert jnp.allclose(out_bypass, ref, atol=1e-5, rtol=1e-5)

    # 2) Force the Pallas kernel path on the same input (copy-free, aligned n).
    out_pallas = jax.block_until_ready(mean_act(x, min_pallas_bytes=0))
    assert out_pallas.shape == x.shape and out_pallas.dtype == x.dtype
    assert jnp.allclose(out_pallas, ref, atol=1e-5, rtol=1e-5)

    # 3) Exercise the ragged fallback path (no multiple-of-128 divisor of n).
    key2 = jax.random.PRNGKey(1)
    y = jax.random.normal(key2, (3, 5, 7), dtype=jnp.float32) * 3.0
    out_ragged = jax.block_until_ready(mean_act(y, min_pallas_bytes=0))
    assert out_ragged.shape == y.shape and out_ragged.dtype == y.dtype
    assert jnp.allclose(out_ragged, _reference(y), atol=1e-5, rtol=1e-5)

    print("KERNEL_OK")
</pallas_src>

<mosaic_0001>
module attributes {stable_mosaic.version = 11 : i64} {
  func.func @_mean_act_kernel(%arg0: i32, %arg1: memref<2x1024xf32, #tpu.memory_space<vmem>>, %arg2: memref<2x1024xf32, #tpu.memory_space<vmem>>) attributes {dimension_semantics = [#tpu.dimension_semantics<parallel>], iteration_bounds = array<i64: 1>, scalar_prefetch = 0 : i64, scratch_operands = 0 : i64, tpu.core_type = #tpu.core_type<tc>, window_params = [{transform_indices = @transform_0, window_bounds = array<i64: 2, 1024>}, {transform_indices = @transform_1, window_bounds = array<i64: 2, 1024>}]} {
    %c0 = arith.constant 0 : index
    %c0_0 = arith.constant 0 : index
    %0 = vector.load %arg1[%c0, %c0_0] : memref<2x1024xf32, #tpu.memory_space<vmem>>, vector<2x1024xf32>
    %1 = math.exp %0 : vector<2x1024xf32>
    %cst = arith.constant 9.99999974E-6 : f32
    %cst_1 = arith.constant 1.000000e+06 : f32
    %2 = vector.broadcast %cst : f32 to vector<2x1024xf32>
    %3 = arith.maximumf %2, %1 : vector<2x1024xf32>
    %4 = vector.broadcast %cst_1 : f32 to vector<2x1024xf32>
    %5 = arith.minimumf %4, %3 : vector<2x1024xf32>
    %c0_2 = arith.constant 0 : index
    %c0_3 = arith.constant 0 : index
    %6 = vector.load %arg2[%c0_2, %c0_3] : memref<2x1024xf32, #tpu.memory_space<vmem>>, vector<2x1024xf32>
    tpu.vector_store %arg2[%c0_2, %c0_3], %5 {strides = array<i32>} : memref<2x1024xf32, #tpu.memory_space<vmem>>, vector<2x1024xf32>,
    return
  }
  func.func @transform_0(%arg0: i32) -> (i32, i32) {
    %c0_i32 = arith.constant 0 : i32
    %c0_i32_0 = arith.constant 0 : i32
    return %arg0, %c0_i32 : i32, i32
  }
  func.func @transform_1(%arg0: i32) -> (i32, i32) {
    %c0_i32 = arith.constant 0 : i32
    %c0_i32_0 = arith.constant 0 : i32
    return %arg0, %c0_i32 : i32, i32
  }
}

</mosaic_0001>

<bundles_post_ra>
// kernel: tpu_custom_call.1
= control target key start
LH: loop header
LB: loop body
LE: loop exit
PB: predicated region body
PF: predicated region fallthrough
CT: control target
= control target key end

     0   :  { %6 = vsyncpa [#allocation3], 0  ;;  %s138_s0 = inlined_call_operand.hbm [shape: f32[2,1024], index: 0, kind: input, shape index: {}]   ;;  %s139_s1 = inlined_call_operand.hbm [shape: f32[2,1024], index: 1, kind: output, shape index: {}]  }
   0x1   :  { %7 = vsyncpa [#allocation4], 0  ;;  %s102_s6 = smov [#allocation2]   ;;  %s54_s10 = scalar_lea.hbm %s138_s0, 256 }
   0x2   :  { %s14_s7 = sshll.u32 %s102_s6, 4  ;;  %p55_p0 = scmp.ne.s32.totalorder %s138_s0, %s54_s10  ;;  %s15_s7 = int_to_ptr.vmem [resolvable:$true] %s14_s7 }
   0x3   :  { %p58_p1 = scmp.lt.u32.totalorder %s54_s10, %s138_s0 }
   0x5   :  { %p60_p2 = pnand %p58_p1, %p55_p0 }
   0x7   :  { %63 = shalt.err (!%p60_p2)
}
   0x8   :  { %s64_s15 = scalar_lea.vmem %s15_s7, 256  ;;  %p69_p4 = scmp.lt.s32.totalorder %s15_s7, %s15_s7 }
   0x9   :  { %p65_p3 = scmp.ne.s32.totalorder %s15_s7, %s64_s15  ;;  %p70_p5 = scmp.lt.s32.totalorder %s64_s15, %s64_s15 }
   0xb   :  { %p71_p6 = por %p70_p5, %p69_p4 }
   0xd   :  { %p72_p7 = pnand %p71_p6, %p65_p3 }
   0xf   :  { %75 = shalt.err (!%p72_p7)
}
  0x10   :  { %17 = dma.hbm_to_vmem [thread:$0]  %s138_s0, 256, %s15_s7, [#allocation3]  }
  0x11   :  { %98 = dma.done.wait [#allocation3], 256  }
  0x12   :  { %99 = vsyncadd [#allocation3], 4294967040  ;;  %v21_v0 = vld [vmem:[#allocation2] sm:$0xff]  ;;  %v22_v1 = vld [vmem:[#allocation2 + $0x8] sm:$0xff]  ;;  %s103_s18 = smov [#allocation5]  }
  0x13   :  { %v23_v2 = vmul.f32 1.442695, %v21_v0  ;;  %v25_v3 = vmul.f32 1.442695, %v22_v1  ;;  %s39_s19 = sshll.u32 %s103_s18, 4  ;;  %s40_s19 = int_to_ptr.vmem [resolvable:$true] %s39_s19 }
  0x14   :  { %s76_s0 = scalar_lea.vmem %s40_s19, 256  ;;  %p81_p9 = scmp.lt.s32.totalorder %s40_s19, %s40_s19 }
  0x15   :  { %50 = vpow2.f32 %v23_v2  ;;  %p77_p8 = scmp.ne.s32.totalorder %s40_s19, %s76_s0  ;;  %p82_p10 = scmp.lt.s32.totalorder %s76_s0, %s76_s0 }
  0x16   :  { %52 = vpow2.f32 %v25_v3 }
  0x17   :  { %p83_p11 = por %p82_p10, %p81_p9 }
  0x19   :  { %p84_p12 = pnand %p83_p11, %p77_p8 }
  0x1f   :  { %v51_v4 = vpop.eup %50 }
  0x20   :  { %v53_v5 = vpop.eup %52  ;;  %v27_v6 = vmax.f32 %v51_v4, 1e-05 }
  0x21   :  { %v28_v7 = vmax.f32 %v53_v5, 1e-05 }
  0x22   :  { %v29_v8 = vmin.f32 %v27_v6, 1000000.0 }
  0x23   :  { %v30_v9 = vmin.f32 %v28_v7, 1000000.0 }
  0x24   :  { %31 = vst [vmem:[#allocation5] sm:$0xff] %v29_v8 }
  0x25   :  { %32 = vst [vmem:[#allocation5 + $0x8] sm:$0xff] %v30_v9 }
  0x26   :  { %87 = shalt.err (!%p84_p12)
}
  0x27   :  { %s88_s22 = scalar_lea.hbm %s139_s1, 256 }
  0x28   :  { %p89_p13 = scmp.ne.s32.totalorder %s139_s1, %s88_s22  ;;  %p92_p0 = scmp.lt.u32.totalorder %s88_s22, %s139_s1 }
  0x2a   :  { %p94_p1 = pnand %p92_p0, %p89_p13 }
  0x2c   :  { %97 = shalt.err (!%p94_p1)
}
  0x2d   :  { %42 = dma.vmem_to_hbm [thread:$0]  %s40_s19, 256, %s139_s1, [#allocation4]  }
  0x2e   :  { %100 = dma.done.wait [#allocation4], 256  }
  0x2f   :  { %101 = vsyncadd [#allocation4], 4294967040 }
  0x30   :  { %46 = vsyncpa [#allocation3], 1 }
  0x31   :  { %47 = vsyncpa [#allocation4], 1 }

</bundles_post_ra>
